<compile_context>
chip_gen: v6e
topology: v6e:2x2x1
jax: 0.10.0
libtpu: 0.0.40
codegen_flags: <defaults>
</compile_context>

<pallas_src>
import functools

import jax
import jax.numpy as jnp
import numpy as np
from jax.experimental import pallas as pl
from jax.experimental.pallas import tpu as pltpu


def _round_up(x, m):
    return (x + m - 1) // m * m


def _make_sam_kernel(C, C1p, K, Wp, HWo, LF, lead, center, compute_dtype,
                     approx_recip):
    """Kernel factory.  All arguments are static Python ints / flags."""

    def kernel(x_ref, moire_ref, mask_ref, w12_ref, w3_ref,
               x1_ref, oimg_ref, opad_ref):
        # x_ref    : (1, C, LF)        flattened, zero-padded, lane-aligned x
        # moire_ref: (1, 3, HWo)       flattened (width-padded) moire image
        # mask_ref : (1, HWo)          f32 0/1 validity mask (grid-invariant)
        # w12_ref  : (K*K, C1p+3, C)   per-tap fused conv1|conv2 weights (cd)
        # w3_ref   : (K*K, C, 3)       per-tap conv3 weights (cd)
        # x1_ref   : (1, C, HWo)       output
        # oimg_ref : (1, 3, HWo)       output
        # opad_ref : (3, LF)           scratch: flattened padded out_img (cd)
        x_full = x_ref[0]                                   # (C, LF), io dtype
        xv = x_full.astype(compute_dtype)                   # cast once (no-op f32)

        # ---- conv1 + conv2 fused: accumulate K*K per-tap matmuls -----------
        acc12 = jnp.zeros((C1p + 3, HWo), jnp.float32)
        for dy in range(K):
            for dx in range(K):
                t = dy * K + dx
                off = lead + dy * Wp + dx
                tap = xv[:, off:off + HWo]                  # (C, HWo)
                acc12 = acc12 + jnp.dot(
                    w12_ref[t], tap, preferred_element_type=jnp.float32)
        acc1 = acc12[:C]                                    # conv1(x), (C, HWo)
        acc2 = acc12[C1p:C1p + 3]                           # conv2(x), (3, HWo)

        # ---- out_img = conv2(x) + moire; zero the (Wp - W) garbage columns
        #      (they double as conv3's horizontal zero padding) ---------------
        mask = mask_ref[...]                                # (1, HWo) 0/1 f32
        out_img = (acc2 + moire_ref[0].astype(jnp.float32)) * mask
        oimg_ref[0] = out_img.astype(oimg_ref.dtype)

        # ---- build flattened zero-padded out_img in scratch (conv3 input) ---
        # Borders are tiny (O(P*Wp)); re-zero them every step (megacore-safe).
        if center > 0:
            opad_ref[:, 0:center] = jnp.zeros((3, center), opad_ref.dtype)
        if LF > center + HWo:
            opad_ref[:, center + HWo:LF] = jnp.zeros(
                (3, LF - center - HWo), opad_ref.dtype)
        opad_ref[:, center:center + HWo] = out_img.astype(opad_ref.dtype)

        # ---- conv3(out_img) -> sigmoid gate -> residual ---------------------
        opv = opad_ref[...]                                 # (3, LF), cd
        acc3 = jnp.zeros((C, HWo), jnp.float32)
        for dy in range(K):
            for dx in range(K):
                t = dy * K + dx
                off = lead + dy * Wp + dx
                tap3 = opv[:, off:off + HWo]                # (3, HWo)
                acc3 = acc3 + jnp.dot(
                    w3_ref[t], tap3, preferred_element_type=jnp.float32)
        # sigmoid(z) = 1 / (1 + exp(-z)); divide goes to the EUP slot.
        x2 = pl.reciprocal(1.0 + jnp.exp(-acc3), approx=approx_recip)

        # Residual: the interior of x is the lane-aligned center-tap slice.
        x_inner = x_full[:, center:center + HWo].astype(jnp.float32)
        x1_ref[0] = (acc1 * x2 + x_inner).astype(x1_ref.dtype)

    return kernel


@functools.partial(jax.jit, static_argnames=("kernel_size", "use_bf16_matmul"))
def sam_forward(x_nchw, moire_nchw, w1_oihw, w2_oihw, w3_oihw, *,
                kernel_size=3, use_bf16_matmul=False):
    """SAM forward.  Inputs in NCHW / OIHW (PyTorch convention)."""
    K = kernel_size
    P = K // 2
    N, C, H, W = x_nchw.shape
    Hp, Wp = H + 2 * P, W + 2 * P
    HWo = H * Wp                       # flattened output length (Wp-wide rows)
    head = P * Wp + P                  # flat offset of first interior element
    lead = (-head) % 128               # lane-align the center tap
    center = lead + head               # multiple of 128
    LF = _round_up(lead + Hp * Wp + 2 * P, 128)   # covers the max tap overrun

    compute_dtype = jnp.bfloat16 if use_bf16_matmul else jnp.float32
    approx_recip = bool(use_bf16_matmul)
    sub = 16 if use_bf16_matmul else 8
    C1p = _round_up(C, sub)            # conv1 rows padded -> conv2 rows aligned
    M12 = C1p + 3
    KK = K * K

    # --- flattened, zero-padded, lane-aligned input x: (N, C, LF) -----------
    xpad = jnp.pad(x_nchw, ((0, 0), (0, 0), (P, P), (P, P)))
    x_flat = jnp.pad(xpad.reshape(N, C, Hp * Wp),
                     ((0, 0), (0, 0), (lead, LF - lead - Hp * Wp)))

    # moire: pad width to Wp and flatten -> (N, 3, HWo).
    moire_flat = jnp.pad(
        moire_nchw, ((0, 0), (0, 0), (0, 0), (0, Wp - W))).reshape(N, 3, HWo)

    # Grid-invariant validity mask for the Wp - W garbage columns.
    mask = jnp.asarray(
        ((np.arange(HWo) % Wp) < W).astype(np.float32)).reshape(1, HWo)

    # Per-tap weights: (K*K, M12, C) and (K*K, C, 3), pre-cast to compute dtype.
    w12 = jnp.zeros((M12, C, K, K), w1_oihw.dtype)
    w12 = w12.at[:C].set(w1_oihw).at[C1p:C1p + 3].set(w2_oihw)
    w12_t = jnp.transpose(w12, (2, 3, 0, 1)).reshape(KK, M12, C)
    w12_t = w12_t.astype(compute_dtype)
    w3_t = jnp.transpose(w3_oihw, (2, 3, 0, 1)).reshape(KK, C, 3)
    w3_t = w3_t.astype(compute_dtype)

    kernel = _make_sam_kernel(C, C1p, K, Wp, HWo, LF, lead, center,
                              compute_dtype, approx_recip)

    # --- VMEM budget from the actual footprint (blocks are double-buffered) --
    it_io = int(x_nchw.dtype.itemsize)
    it_cd = 2 if use_bf16_matmul else 4
    bytes_blocks = (
        2 * it_io * (C * LF + 3 * HWo + HWo)            # x, moire, mask
        + 2 * it_cd * KK * (M12 * C + C * 3)            # weights
        + 2 * it_io * (C + 3) * HWo)                    # outputs
    bytes_scratch = it_cd * 3 * LF
    bytes_live = (
        it_cd * C * LF                                  # xv cast (bf16 path)
        + 4 * (M12 + 3 + 2 * C + 3) * HWo               # acc12/out_img/acc3/x2/res
        + it_cd * (C + 3) * HWo)                        # tap temporaries
    vmem_needed = bytes_blocks + bytes_scratch + bytes_live + (4 << 20)
    try:
        vmem_cap = int(pltpu.get_tpu_info().vmem_capacity_bytes)
    except Exception:  # pragma: no cover - conservative fallback
        vmem_cap = 64 * 1024 * 1024
    vmem_limit = int(min(vmem_cap, max(vmem_needed, 16 << 20)))

    x1_flat, oimg_flat = pl.pallas_call(
        kernel,
        out_shape=(jax.ShapeDtypeStruct((N, C, HWo), x_nchw.dtype),
                   jax.ShapeDtypeStruct((N, 3, HWo), x_nchw.dtype)),
        grid_spec=pltpu.PrefetchScalarGridSpec(
            num_scalar_prefetch=0,
            grid=(N,),
            in_specs=[
                pl.BlockSpec((1, C, LF), lambda i: (i, 0, 0)),
                pl.BlockSpec((1, 3, HWo), lambda i: (i, 0, 0)),
                pl.BlockSpec((1, HWo), lambda i: (0, 0)),
                pl.BlockSpec((KK, M12, C), lambda i: (0, 0, 0)),
                pl.BlockSpec((KK, C, 3), lambda i: (0, 0, 0)),
            ],
            out_specs=[
                pl.BlockSpec((1, C, HWo), lambda i: (i, 0, 0)),
                pl.BlockSpec((1, 3, HWo), lambda i: (i, 0, 0)),
            ],
            scratch_shapes=[pltpu.VMEM((3, LF), compute_dtype)],
        ),
        compiler_params=pltpu.CompilerParams(
            dimension_semantics=("parallel",),
            vmem_limit_bytes=vmem_limit),
    )(x_flat, moire_flat, mask, w12_t, w3_t)

    # Lane-dense kernel outputs -> NCHW via reshape + width slice only.
    # (A consumer that can work on Wp-wide rows should skip this slice.)
    x1 = x1_flat.reshape(N, C, H, Wp)[:, :, :, :W]
    out_img = oimg_flat.reshape(N, 3, H, Wp)[:, :, :, :W]
    return x1, out_img


def _reference_sam(x_nchw, moire_nchw, w1, w2, w3):
    """Pure-JAX reference (lax conv) in the same NCHW convention."""
    def conv(inp, w):
        return jax.lax.conv_general_dilated(
            inp, w, window_strides=(1, 1), padding="SAME",
            dimension_numbers=("NCHW", "OIHW", "NCHW"))
    x1 = conv(x_nchw, w1)
    out_img = conv(x_nchw, w2) + moire_nchw
    x2 = jax.nn.sigmoid(conv(out_img, w3))
    x1 = x1 * x2 + x_nchw
    return x1, out_img


if __name__ == "__main__":
    # Small synthetic config: batch=2, channels=4, 16x16 spatial, k=3.
    N, C, H, W, K = 2, 4, 16, 16, 3

    key = jax.random.PRNGKey(0)
    kx, km, k1, k2, k3 = jax.random.split(key, 5)

    x = jax.random.normal(kx, (N, C, H, W), jnp.float32)
    moire = jax.random.normal(km, (N, 3, H, W), jnp.float32)

    # Conv2d weight shapes (Cout, Cin, K, K), no bias.
    fan1 = C * K * K
    w1 = jax.random.uniform(k1, (C, C, K, K), jnp.float32,
                            -1.0 / np.sqrt(fan1), 1.0 / np.sqrt(fan1))
    w2 = jax.random.uniform(k2, (3, C, K, K), jnp.float32,
                            -1.0 / np.sqrt(fan1), 1.0 / np.sqrt(fan1))
    fan3 = 3 * K * K
    w3 = jax.random.uniform(k3, (C, 3, K, K), jnp.float32,
                            -1.0 / np.sqrt(fan3), 1.0 / np.sqrt(fan3))

    # f32 path: strict correctness check against a pure-JAX reference.
    x1_out, oimg_out = sam_forward(x, moire, w1, w2, w3, kernel_size=K)
    jax.block_until_ready((x1_out, oimg_out))

    x1_ref, oimg_ref = _reference_sam(x, moire, w1, w2, w3)
    np.testing.assert_allclose(np.asarray(oimg_out), np.asarray(oimg_ref),
                               rtol=1e-4, atol=1e-4)
    np.testing.assert_allclose(np.asarray(x1_out), np.asarray(x1_ref),
                               rtol=1e-4, atol=1e-4)

    # bf16-matmul path (recommended on v5e/v6e/v7x MXUs); f32 accumulation
    # keeps it close to the f32 reference -- loose tolerance (rounded inputs,
    # approximate EUP reciprocal in the sigmoid).
    x1_bf, oimg_bf = sam_forward(x, moire, w1, w2, w3, kernel_size=K,
                                 use_bf16_matmul=True)
    jax.block_until_ready((x1_bf, oimg_bf))
    np.testing.assert_allclose(np.asarray(oimg_bf), np.asarray(oimg_ref),
                               rtol=1e-1, atol=1e-1)
    np.testing.assert_allclose(np.asarray(x1_bf), np.asarray(x1_ref),
                               rtol=1e-1, atol=1e-1)

    print("KERNEL_OK")
</pallas_src>

<mosaic_0001>
module attributes {stable_mosaic.version = 11 : i64} {
  func.func @kernel(%arg0: i32, %arg1: memref<1x4x512xf32, #tpu.memory_space<vmem>>, %arg2: memref<1x3x288xf32, #tpu.memory_space<vmem>>, %arg3: memref<1x288xf32, #tpu.memory_space<vmem>>, %arg4: memref<9x11x4xf32, #tpu.memory_space<vmem>>, %arg5: memref<9x4x3xf32, #tpu.memory_space<vmem>>, %arg6: memref<1x4x288xf32, #tpu.memory_space<vmem>>, %arg7: memref<1x3x288xf32, #tpu.memory_space<vmem>>, %arg8: memref<3x512xf32, #tpu.memory_space<vmem>>) attributes {dimension_semantics = [#tpu.dimension_semantics<parallel>], iteration_bounds = array<i64: 2>, scalar_prefetch = 0 : i64, scratch_operands = 1 : i64, tpu.core_type = #tpu.core_type<tc>, window_params = [{transform_indices = @transform_0, window_bounds = array<i64: 1, 4, 512>}, {transform_indices = @transform_1, window_bounds = array<i64: 1, 3, 288>}, {pipeline_mode = #tpu.pipeline_mode<synchronous>, transform_indices = @transform_2, window_bounds = array<i64: 1, 288>}, {pipeline_mode = #tpu.pipeline_mode<synchronous>, transform_indices = @transform_3, window_bounds = array<i64: 9, 11, 4>}, {pipeline_mode = #tpu.pipeline_mode<synchronous>, transform_indices = @transform_4, window_bounds = array<i64: 9, 4, 3>}, {transform_indices = @transform_5, window_bounds = array<i64: 1, 4, 288>}, {transform_indices = @transform_6, window_bounds = array<i64: 1, 3, 288>}]} {
    %c0 = arith.constant 0 : index
    %c0_0 = arith.constant 0 : index
    %c0_1 = arith.constant 0 : index
    %0 = vector.load %arg1[%c0, %c0_0, %c0_1] : memref<1x4x512xf32, #tpu.memory_space<vmem>>, vector<1x4x512xf32>
    %1 = vector.shape_cast %0 : vector<1x4x512xf32> to vector<4x512xf32>
    %cst = arith.constant 0.000000e+00 : f32
    %2 = vector.broadcast %cst : f32 to vector<11x288xf32>
    %3 = vector.extract_strided_slice %1 {offsets = [0, 109], sizes = [4, 288], strides = [1, 1]} : vector<4x512xf32> to vector<4x288xf32>
    %c0_2 = arith.constant 0 : index
    %c0_3 = arith.constant 0 : index
    %c0_4 = arith.constant 0 : index
    %4 = vector.load %arg4[%c0_2, %c0_3, %c0_4] : memref<9x11x4xf32, #tpu.memory_space<vmem>>, vector<1x11x4xf32>
    %5 = vector.shape_cast %4 : vector<1x11x4xf32> to vector<11x4xf32>
    %cst_5 = arith.constant dense<0.000000e+00> : vector<11x288xf32>
    %6 = tpu.matmul %5, %3, %cst_5 {dimension_numbers = #tpu.dot_dimension_numbers<[1], [0], [0], [1], [0, 0, 1, 1], [], []>} : vector<11x4xf32>, vector<4x288xf32>, vector<11x288xf32> -> vector<11x288xf32>
    %7 = arith.addf %2, %6 : vector<11x288xf32>
    %8 = vector.extract_strided_slice %1 {offsets = [0, 110], sizes = [4, 288], strides = [1, 1]} : vector<4x512xf32> to vector<4x288xf32>
    %c1 = arith.constant 1 : index
    %c0_6 = arith.constant 0 : index
    %c0_7 = arith.constant 0 : index
    %9 = vector.load %arg4[%c1, %c0_6, %c0_7] : memref<9x11x4xf32, #tpu.memory_space<vmem>>, vector<1x11x4xf32>
    %10 = vector.shape_cast %9 : vector<1x11x4xf32> to vector<11x4xf32>
    %cst_8 = arith.constant dense<0.000000e+00> : vector<11x288xf32>
    %11 = tpu.matmul %10, %8, %cst_8 {dimension_numbers = #tpu.dot_dimension_numbers<[1], [0], [0], [1], [0, 0, 1, 1], [], []>} : vector<11x4xf32>, vector<4x288xf32>, vector<11x288xf32> -> vector<11x288xf32>
    %12 = arith.addf %7, %11 : vector<11x288xf32>
    %13 = vector.extract_strided_slice %1 {offsets = [0, 111], sizes = [4, 288], strides = [1, 1]} : vector<4x512xf32> to vector<4x288xf32>
    %c2 = arith.constant 2 : index
    %c0_9 = arith.constant 0 : index
    %c0_10 = arith.constant 0 : index
    %14 = vector.load %arg4[%c2, %c0_9, %c0_10] : memref<9x11x4xf32, #tpu.memory_space<vmem>>, vector<1x11x4xf32>
    %15 = vector.shape_cast %14 : vector<1x11x4xf32> to vector<11x4xf32>
    %cst_11 = arith.constant dense<0.000000e+00> : vector<11x288xf32>
    %16 = tpu.matmul %15, %13, %cst_11 {dimension_numbers = #tpu.dot_dimension_numbers<[1], [0], [0], [1], [0, 0, 1, 1], [], []>} : vector<11x4xf32>, vector<4x288xf32>, vector<11x288xf32> -> vector<11x288xf32>
    %17 = arith.addf %12, %16 : vector<11x288xf32>
    %18 = vector.extract_strided_slice %1 {offsets = [0, 127], sizes = [4, 288], strides = [1, 1]} : vector<4x512xf32> to vector<4x288xf32>
    %c3 = arith.constant 3 : index
    %c0_12 = arith.constant 0 : index
    %c0_13 = arith.constant 0 : index
    %19 = vector.load %arg4[%c3, %c0_12, %c0_13] : memref<9x11x4xf32, #tpu.memory_space<vmem>>, vector<1x11x4xf32>
    %20 = vector.shape_cast %19 : vector<1x11x4xf32> to vector<11x4xf32>
    %cst_14 = arith.constant dense<0.000000e+00> : vector<11x288xf32>
    %21 = tpu.matmul %20, %18, %cst_14 {dimension_numbers = #tpu.dot_dimension_numbers<[1], [0], [0], [1], [0, 0, 1, 1], [], []>} : vector<11x4xf32>, vector<4x288xf32>, vector<11x288xf32> -> vector<11x288xf32>
    %22 = arith.addf %17, %21 : vector<11x288xf32>
    %23 = vector.extract_strided_slice %1 {offsets = [0, 128], sizes = [4, 288], strides = [1, 1]} : vector<4x512xf32> to vector<4x288xf32>
    %c4 = arith.constant 4 : index
    %c0_15 = arith.constant 0 : index
    %c0_16 = arith.constant 0 : index
    %24 = vector.load %arg4[%c4, %c0_15, %c0_16] : memref<9x11x4xf32, #tpu.memory_space<vmem>>, vector<1x11x4xf32>
    %25 = vector.shape_cast %24 : vector<1x11x4xf32> to vector<11x4xf32>
    %cst_17 = arith.constant dense<0.000000e+00> : vector<11x288xf32>
    %26 = tpu.matmul %25, %23, %cst_17 {dimension_numbers = #tpu.dot_dimension_numbers<[1], [0], [0], [1], [0, 0, 1, 1], [], []>} : vector<11x4xf32>, vector<4x288xf32>, vector<11x288xf32> -> vector<11x288xf32>
    %27 = arith.addf %22, %26 : vector<11x288xf32>
    %28 = vector.extract_strided_slice %1 {offsets = [0, 129], sizes = [4, 288], strides = [1, 1]} : vector<4x512xf32> to vector<4x288xf32>
    %c5 = arith.constant 5 : index
    %c0_18 = arith.constant 0 : index
    %c0_19 = arith.constant 0 : index
    %29 = vector.load %arg4[%c5, %c0_18, %c0_19] : memref<9x11x4xf32, #tpu.memory_space<vmem>>, vector<1x11x4xf32>
    %30 = vector.shape_cast %29 : vector<1x11x4xf32> to vector<11x4xf32>
    %cst_20 = arith.constant dense<0.000000e+00> : vector<11x288xf32>
    %31 = tpu.matmul %30, %28, %cst_20 {dimension_numbers = #tpu.dot_dimension_numbers<[1], [0], [0], [1], [0, 0, 1, 1], [], []>} : vector<11x4xf32>, vector<4x288xf32>, vector<11x288xf32> -> vector<11x288xf32>
    %32 = arith.addf %27, %31 : vector<11x288xf32>
    %33 = vector.extract_strided_slice %1 {offsets = [0, 145], sizes = [4, 288], strides = [1, 1]} : vector<4x512xf32> to vector<4x288xf32>
    %c6 = arith.constant 6 : index
    %c0_21 = arith.constant 0 : index
    %c0_22 = arith.constant 0 : index
    %34 = vector.load %arg4[%c6, %c0_21, %c0_22] : memref<9x11x4xf32, #tpu.memory_space<vmem>>, vector<1x11x4xf32>
    %35 = vector.shape_cast %34 : vector<1x11x4xf32> to vector<11x4xf32>
    %cst_23 = arith.constant dense<0.000000e+00> : vector<11x288xf32>
    %36 = tpu.matmul %35, %33, %cst_23 {dimension_numbers = #tpu.dot_dimension_numbers<[1], [0], [0], [1], [0, 0, 1, 1], [], []>} : vector<11x4xf32>, vector<4x288xf32>, vector<11x288xf32> -> vector<11x288xf32>
    %37 = arith.addf %32, %36 : vector<11x288xf32>
    %38 = vector.extract_strided_slice %1 {offsets = [0, 146], sizes = [4, 288], strides = [1, 1]} : vector<4x512xf32> to vector<4x288xf32>
    %c7 = arith.constant 7 : index
    %c0_24 = arith.constant 0 : index
    %c0_25 = arith.constant 0 : index
    %39 = vector.load %arg4[%c7, %c0_24, %c0_25] : memref<9x11x4xf32, #tpu.memory_space<vmem>>, vector<1x11x4xf32>
    %40 = vector.shape_cast %39 : vector<1x11x4xf32> to vector<11x4xf32>
    %cst_26 = arith.constant dense<0.000000e+00> : vector<11x288xf32>
    %41 = tpu.matmul %40, %38, %cst_26 {dimension_numbers = #tpu.dot_dimension_numbers<[1], [0], [0], [1], [0, 0, 1, 1], [], []>} : vector<11x4xf32>, vector<4x288xf32>, vector<11x288xf32> -> vector<11x288xf32>
    %42 = arith.addf %37, %41 : vector<11x288xf32>
    %43 = vector.extract_strided_slice %1 {offsets = [0, 147], sizes = [4, 288], strides = [1, 1]} : vector<4x512xf32> to vector<4x288xf32>
    %c8 = arith.constant 8 : index
    %c0_27 = arith.constant 0 : index
    %c0_28 = arith.constant 0 : index
    %44 = vector.load %arg4[%c8, %c0_27, %c0_28] : memref<9x11x4xf32, #tpu.memory_space<vmem>>, vector<1x11x4xf32>
    %45 = vector.shape_cast %44 : vector<1x11x4xf32> to vector<11x4xf32>
    %cst_29 = arith.constant dense<0.000000e+00> : vector<11x288xf32>
    %46 = tpu.matmul %45, %43, %cst_29 {dimension_numbers = #tpu.dot_dimension_numbers<[1], [0], [0], [1], [0, 0, 1, 1], [], []>} : vector<11x4xf32>, vector<4x288xf32>, vector<11x288xf32> -> vector<11x288xf32>
    %47 = arith.addf %42, %46 : vector<11x288xf32>
    %48 = vector.extract_strided_slice %47 {offsets = [0, 0], sizes = [4, 288], strides = [1, 1]} : vector<11x288xf32> to vector<4x288xf32>
    %49 = vector.extract_strided_slice %47 {offsets = [8, 0], sizes = [3, 288], strides = [1, 1]} : vector<11x288xf32> to vector<3x288xf32>
    %c0_30 = arith.constant 0 : index
    %c0_31 = arith.constant 0 : index
    %50 = vector.load %arg3[%c0_30, %c0_31] : memref<1x288xf32, #tpu.memory_space<vmem>>, vector<1x288xf32>
    %c0_32 = arith.constant 0 : index
    %c0_33 = arith.constant 0 : index
    %c0_34 = arith.constant 0 : index
    %51 = vector.load %arg2[%c0_32, %c0_33, %c0_34] : memref<1x3x288xf32, #tpu.memory_space<vmem>>, vector<1x3x288xf32>
    %52 = vector.shape_cast %51 : vector<1x3x288xf32> to vector<3x288xf32>
    %53 = arith.addf %49, %52 : vector<3x288xf32>
    %54 = vector.broadcast %50 : vector<1x288xf32> to vector<3x288xf32>
    %55 = arith.mulf %53, %54 : vector<3x288xf32>
    %c0_35 = arith.constant 0 : index
    %c0_36 = arith.constant 0 : index
    %c0_37 = arith.constant 0 : index
    %56 = vector.load %arg7[%c0_35, %c0_36, %c0_37] : memref<1x3x288xf32, #tpu.memory_space<vmem>>, vector<1x3x288xf32>
    %57 = vector.shape_cast %56 : vector<1x3x288xf32> to vector<3x288xf32>
    %58 = vector.shape_cast %55 : vector<3x288xf32> to vector<1x3x288xf32>
    tpu.vector_store %arg7[%c0_35, %c0_36, %c0_37], %58 {strides = array<i32>} : memref<1x3x288xf32, #tpu.memory_space<vmem>>, vector<1x3x288xf32>,
    %cst_38 = arith.constant 0.000000e+00 : f32
    %59 = vector.broadcast %cst_38 : f32 to vector<3x128xf32>
    %c0_39 = arith.constant 0 : index
    %c0_40 = arith.constant 0 : index
    %60 = vector.load %arg8[%c0_39, %c0_40] : memref<3x512xf32, #tpu.memory_space<vmem>>, vector<3x128xf32>
    tpu.vector_store %arg8[%c0_39, %c0_40], %59 {strides = array<i32>} : memref<3x512xf32, #tpu.memory_space<vmem>>, vector<3x128xf32>,
    %cst_41 = arith.constant 0.000000e+00 : f32
    %61 = vector.broadcast %cst_41 : f32 to vector<3x96xf32>
    %c0_42 = arith.constant 0 : index
    %c416 = arith.constant 416 : index
    %62 = vector.load %arg8[%c0_42, %c416] : memref<3x512xf32, #tpu.memory_space<vmem>>, vector<3x96xf32>
    tpu.vector_store %arg8[%c0_42, %c416], %61 {strides = array<i32>} : memref<3x512xf32, #tpu.memory_space<vmem>>, vector<3x96xf32>,
    %c0_43 = arith.constant 0 : index
    %c128 = arith.constant 128 : index
    %63 = vector.load %arg8[%c0_43, %c128] : memref<3x512xf32, #tpu.memory_space<vmem>>, vector<3x288xf32>
    tpu.vector_store %arg8[%c0_43, %c128], %55 {strides = array<i32>} : memref<3x512xf32, #tpu.memory_space<vmem>>, vector<3x288xf32>,
    %c0_44 = arith.constant 0 : index
    %c0_45 = arith.constant 0 : index
    %64 = vector.load %arg8[%c0_44, %c0_45] : memref<3x512xf32, #tpu.memory_space<vmem>>, vector<3x512xf32>
    %cst_46 = arith.constant 0.000000e+00 : f32
    %65 = vector.broadcast %cst_46 : f32 to vector<4x288xf32>
    %66 = vector.extract_strided_slice %64 {offsets = [0, 109], sizes = [3, 288], strides = [1, 1]} : vector<3x512xf32> to vector<3x288xf32>
    %c0_47 = arith.constant 0 : index
    %c0_48 = arith.constant 0 : index
    %c0_49 = arith.constant 0 : index
    %67 = vector.load %arg5[%c0_47, %c0_48, %c0_49] : memref<9x4x3xf32, #tpu.memory_space<vmem>>, vector<1x4x3xf32>
    %68 = vector.shape_cast %67 : vector<1x4x3xf32> to vector<4x3xf32>
    %cst_50 = arith.constant dense<0.000000e+00> : vector<4x288xf32>
    %69 = tpu.matmul %68, %66, %cst_50 {dimension_numbers = #tpu.dot_dimension_numbers<[1], [0], [0], [1], [0, 0, 1, 1], [], []>} : vector<4x3xf32>, vector<3x288xf32>, vector<4x288xf32> -> vector<4x288xf32>
    %70 = arith.addf %65, %69 : vector<4x288xf32>
    %71 = vector.extract_strided_slice %64 {offsets = [0, 110], sizes = [3, 288], strides = [1, 1]} : vector<3x512xf32> to vector<3x288xf32>
    %c1_51 = arith.constant 1 : index
    %c0_52 = arith.constant 0 : index
    %c0_53 = arith.constant 0 : index
    %72 = vector.load %arg5[%c1_51, %c0_52, %c0_53] : memref<9x4x3xf32, #tpu.memory_space<vmem>>, vector<1x4x3xf32>
    %73 = vector.shape_cast %72 : vector<1x4x3xf32> to vector<4x3xf32>
    %cst_54 = arith.constant dense<0.000000e+00> : vector<4x288xf32>
    %74 = tpu.matmul %73, %71, %cst_54 {dimension_numbers = #tpu.dot_dimension_numbers<[1], [0], [0], [1], [0, 0, 1, 1], [], []>} : vector<4x3xf32>, vector<3x288xf32>, vector<4x288xf32> -> vector<4x288xf32>
    %75 = arith.addf %70, %74 : vector<4x288xf32>
    %76 = vector.extract_strided_slice %64 {offsets = [0, 111], sizes = [3, 288], strides = [1, 1]} : vector<3x512xf32> to vector<3x288xf32>
    %c2_55 = arith.constant 2 : index
    %c0_56 = arith.constant 0 : index
    %c0_57 = arith.constant 0 : index
    %77 = vector.load %arg5[%c2_55, %c0_56, %c0_57] : memref<9x4x3xf32, #tpu.memory_space<vmem>>, vector<1x4x3xf32>
    %78 = vector.shape_cast %77 : vector<1x4x3xf32> to vector<4x3xf32>
    %cst_58 = arith.constant dense<0.000000e+00> : vector<4x288xf32>
    %79 = tpu.matmul %78, %76, %cst_58 {dimension_numbers = #tpu.dot_dimension_numbers<[1], [0], [0], [1], [0, 0, 1, 1], [], []>} : vector<4x3xf32>, vector<3x288xf32>, vector<4x288xf32> -> vector<4x288xf32>
    %80 = arith.addf %75, %79 : vector<4x288xf32>
    %81 = vector.extract_strided_slice %64 {offsets = [0, 127], sizes = [3, 288], strides = [1, 1]} : vector<3x512xf32> to vector<3x288xf32>
    %c3_59 = arith.constant 3 : index
    %c0_60 = arith.constant 0 : index
    %c0_61 = arith.constant 0 : index
    %82 = vector.load %arg5[%c3_59, %c0_60, %c0_61] : memref<9x4x3xf32, #tpu.memory_space<vmem>>, vector<1x4x3xf32>
    %83 = vector.shape_cast %82 : vector<1x4x3xf32> to vector<4x3xf32>
    %cst_62 = arith.constant dense<0.000000e+00> : vector<4x288xf32>
    %84 = tpu.matmul %83, %81, %cst_62 {dimension_numbers = #tpu.dot_dimension_numbers<[1], [0], [0], [1], [0, 0, 1, 1], [], []>} : vector<4x3xf32>, vector<3x288xf32>, vector<4x288xf32> -> vector<4x288xf32>
    %85 = arith.addf %80, %84 : vector<4x288xf32>
    %86 = vector.extract_strided_slice %64 {offsets = [0, 128], sizes = [3, 288], strides = [1, 1]} : vector<3x512xf32> to vector<3x288xf32>
    %c4_63 = arith.constant 4 : index
    %c0_64 = arith.constant 0 : index
    %c0_65 = arith.constant 0 : index
    %87 = vector.load %arg5[%c4_63, %c0_64, %c0_65] : memref<9x4x3xf32, #tpu.memory_space<vmem>>, vector<1x4x3xf32>
    %88 = vector.shape_cast %87 : vector<1x4x3xf32> to vector<4x3xf32>
    %cst_66 = arith.constant dense<0.000000e+00> : vector<4x288xf32>
    %89 = tpu.matmul %88, %86, %cst_66 {dimension_numbers = #tpu.dot_dimension_numbers<[1], [0], [0], [1], [0, 0, 1, 1], [], []>} : vector<4x3xf32>, vector<3x288xf32>, vector<4x288xf32> -> vector<4x288xf32>
    %90 = arith.addf %85, %89 : vector<4x288xf32>
    %91 = vector.extract_strided_slice %64 {offsets = [0, 129], sizes = [3, 288], strides = [1, 1]} : vector<3x512xf32> to vector<3x288xf32>
    %c5_67 = arith.constant 5 : index
    %c0_68 = arith.constant 0 : index
    %c0_69 = arith.constant 0 : index
    %92 = vector.load %arg5[%c5_67, %c0_68, %c0_69] : memref<9x4x3xf32, #tpu.memory_space<vmem>>, vector<1x4x3xf32>
    %93 = vector.shape_cast %92 : vector<1x4x3xf32> to vector<4x3xf32>
    %cst_70 = arith.constant dense<0.000000e+00> : vector<4x288xf32>
    %94 = tpu.matmul %93, %91, %cst_70 {dimension_numbers = #tpu.dot_dimension_numbers<[1], [0], [0], [1], [0, 0, 1, 1], [], []>} : vector<4x3xf32>, vector<3x288xf32>, vector<4x288xf32> -> vector<4x288xf32>
    %95 = arith.addf %90, %94 : vector<4x288xf32>
    %96 = vector.extract_strided_slice %64 {offsets = [0, 145], sizes = [3, 288], strides = [1, 1]} : vector<3x512xf32> to vector<3x288xf32>
    %c6_71 = arith.constant 6 : index
    %c0_72 = arith.constant 0 : index
    %c0_73 = arith.constant 0 : index
    %97 = vector.load %arg5[%c6_71, %c0_72, %c0_73] : memref<9x4x3xf32, #tpu.memory_space<vmem>>, vector<1x4x3xf32>
    %98 = vector.shape_cast %97 : vector<1x4x3xf32> to vector<4x3xf32>
    %cst_74 = arith.constant dense<0.000000e+00> : vector<4x288xf32>
    %99 = tpu.matmul %98, %96, %cst_74 {dimension_numbers = #tpu.dot_dimension_numbers<[1], [0], [0], [1], [0, 0, 1, 1], [], []>} : vector<4x3xf32>, vector<3x288xf32>, vector<4x288xf32> -> vector<4x288xf32>
    %100 = arith.addf %95, %99 : vector<4x288xf32>
    %101 = vector.extract_strided_slice %64 {offsets = [0, 146], sizes = [3, 288], strides = [1, 1]} : vector<3x512xf32> to vector<3x288xf32>
    %c7_75 = arith.constant 7 : index
    %c0_76 = arith.constant 0 : index
    %c0_77 = arith.constant 0 : index
    %102 = vector.load %arg5[%c7_75, %c0_76, %c0_77] : memref<9x4x3xf32, #tpu.memory_space<vmem>>, vector<1x4x3xf32>
    %103 = vector.shape_cast %102 : vector<1x4x3xf32> to vector<4x3xf32>
    %cst_78 = arith.constant dense<0.000000e+00> : vector<4x288xf32>
    %104 = tpu.matmul %103, %101, %cst_78 {dimension_numbers = #tpu.dot_dimension_numbers<[1], [0], [0], [1], [0, 0, 1, 1], [], []>} : vector<4x3xf32>, vector<3x288xf32>, vector<4x288xf32> -> vector<4x288xf32>
    %105 = arith.addf %100, %104 : vector<4x288xf32>
    %106 = vector.extract_strided_slice %64 {offsets = [0, 147], sizes = [3, 288], strides = [1, 1]} : vector<3x512xf32> to vector<3x288xf32>
    %c8_79 = arith.constant 8 : index
    %c0_80 = arith.constant 0 : index
    %c0_81 = arith.constant 0 : index
    %107 = vector.load %arg5[%c8_79, %c0_80, %c0_81] : memref<9x4x3xf32, #tpu.memory_space<vmem>>, vector<1x4x3xf32>
    %108 = vector.shape_cast %107 : vector<1x4x3xf32> to vector<4x3xf32>
    %cst_82 = arith.constant dense<0.000000e+00> : vector<4x288xf32>
    %109 = tpu.matmul %108, %106, %cst_82 {dimension_numbers = #tpu.dot_dimension_numbers<[1], [0], [0], [1], [0, 0, 1, 1], [], []>} : vector<4x3xf32>, vector<3x288xf32>, vector<4x288xf32> -> vector<4x288xf32>
    %110 = arith.addf %105, %109 : vector<4x288xf32>
    %cst_83 = arith.constant 0.000000e+00 : f32
    %111 = vector.broadcast %cst_83 : f32 to vector<4x288xf32>
    %112 = arith.subf %111, %110 : vector<4x288xf32>
    %113 = math.exp %112 : vector<4x288xf32>
    %cst_84 = arith.constant 1.000000e+00 : f32
    %114 = vector.broadcast %cst_84 : f32 to vector<4x288xf32>
    %115 = arith.addf %114, %113 : vector<4x288xf32>
    %116 = tpu.reciprocal %115 : vector<4x288xf32> -> vector<4x288xf32>
    %117 = vector.extract_strided_slice %1 {offsets = [0, 128], sizes = [4, 288], strides = [1, 1]} : vector<4x512xf32> to vector<4x288xf32>
    %118 = arith.mulf %48, %116 : vector<4x288xf32>
    %119 = arith.addf %118, %117 : vector<4x288xf32>
    %c0_85 = arith.constant 0 : index
    %c0_86 = arith.constant 0 : index
    %c0_87 = arith.constant 0 : index
    %120 = vector.load %arg6[%c0_85, %c0_86, %c0_87] : memref<1x4x288xf32, #tpu.memory_space<vmem>>, vector<1x4x288xf32>
    %121 = vector.shape_cast %120 : vector<1x4x288xf32> to vector<4x288xf32>
    %122 = vector.shape_cast %119 : vector<4x288xf32> to vector<1x4x288xf32>
    tpu.vector_store %arg6[%c0_85, %c0_86, %c0_87], %122 {strides = array<i32>} : memref<1x4x288xf32, #tpu.memory_space<vmem>>, vector<1x4x288xf32>,
    return
  }
  func.func @transform_0(%arg0: i32) -> (i32, i32, i32) {
    %c0_i32 = arith.constant 0 : i32
    %c0_i32_0 = arith.constant 0 : i32
    %c0_i32_1 = arith.constant 0 : i32
    return %arg0, %c0_i32, %c0_i32_0 : i32, i32, i32
  }
  func.func @transform_1(%arg0: i32) -> (i32, i32, i32) {
    %c0_i32 = arith.constant 0 : i32
    %c0_i32_0 = arith.constant 0 : i32
    %c0_i32_1 = arith.constant 0 : i32
    return %arg0, %c0_i32, %c0_i32_0 : i32, i32, i32
  }
  func.func @transform_2(%arg0: i32) -> (i32, i32) {
    %c0_i32 = arith.constant 0 : i32
    %c0_i32_0 = arith.constant 0 : i32
    %c0_i32_1 = arith.constant 0 : i32
    return %c0_i32, %c0_i32_0 : i32, i32
  }
  func.func @transform_3(%arg0: i32) -> (i32, i32, i32) {
    %c0_i32 = arith.constant 0 : i32
    %c0_i32_0 = arith.constant 0 : i32
    %c0_i32_1 = arith.constant 0 : i32
    %c0_i32_2 = arith.constant 0 : i32
    return %c0_i32, %c0_i32_0, %c0_i32_1 : i32, i32, i32
  }
  func.func @transform_4(%arg0: i32) -> (i32, i32, i32) {
    %c0_i32 = arith.constant 0 : i32
    %c0_i32_0 = arith.constant 0 : i32
    %c0_i32_1 = arith.constant 0 : i32
    %c0_i32_2 = arith.constant 0 : i32
    return %c0_i32, %c0_i32_0, %c0_i32_1 : i32, i32, i32
  }
  func.func @transform_5(%arg0: i32) -> (i32, i32, i32) {
    %c0_i32 = arith.constant 0 : i32
    %c0_i32_0 = arith.constant 0 : i32
    %c0_i32_1 = arith.constant 0 : i32
    return %arg0, %c0_i32, %c0_i32_0 : i32, i32, i32
  }
  func.func @transform_6(%arg0: i32) -> (i32, i32, i32) {
    %c0_i32 = arith.constant 0 : i32
    %c0_i32_0 = arith.constant 0 : i32
    %c0_i32_1 = arith.constant 0 : i32
    return %arg0, %c0_i32, %c0_i32_0 : i32, i32, i32
  }
}

</mosaic_0001>

<bundles_post_ra>
// kernel: sam_forward.1
= control target key start
LH: loop header
LB: loop body
LE: loop exit
PB: predicated region body
PF: predicated region fallthrough
CT: control target
= control target key end

     0   :  { %s3932_s21 = smov 0   ;;  %s4411_s0 = inlined_call_operand.vmem [shape: f32[2,4,512], index: 0, kind: input, shape index: {}]   ;;  %s4412_s1 = inlined_call_operand.vmem [shape: f32[2,3,288], index: 1, kind: input, shape index: {}]   ;;  %s4413_s2 = inlined_call_operand.vmem [shape: f32[1,288], index: 2, kind: input, shape index: {}]   ;;  %s4414_s3 = inlined_call_operand.vmem [shape: f32[9,11,4], index: 3, kind: input, shape index: {}]   ;;  %s4415_s4 = inlined_call_operand.vmem [shape: f32[9,4,3], index: 4, kind: input, shape index: {}]   ;;  %s4416_s5 = inlined_call_operand.vmem [shape: f32[2,4,288], index: 5, kind: output, shape index: {0}]   ;;  %s4417_s6 = inlined_call_operand.vmem [shape: f32[2,3,288], index: 6, kind: output, shape index: {1}]  }
   0x1 LB: > { %s3563_s22 = sadd.s32 4294967295, %s3885_s21   ;;  %p3567_p0 = scmp.ge.s32.totalorder %s3885_s21, 1  ;;  %s3885_s21 = sphi %s3932_s21, %s17_s21  }
   0x2   : > { %p225_p1 = scmp.lt.s32.totalorder %s3885_s21, 3 }
   0x4   : > { %p226_p2 = pnand %p3567_p0, %p225_p1 }
   0x5   : > { %p265_p3 = scmp.lt.s32.totalorder (!%p226_p2), %s3563_s22, 1  ;;  %s3888_s29 = smov (!%p226_p2), 18  }
   0x6   : > { %229 = sbr.rel (%p226_p2) target bundleno = 811 (0x32b), region = 40  ;;  %s3889_s30 = smov (!%p226_p2), 19  }
   0x7   : > { %s3890_s7 = smov (!%p226_p2), 17   ;;  %s3891_s8 = smov (!%p226_p2), 1  }
   0x8   : > { %s3892_s9 = smov (!%p226_p2), 127   ;;  %s3893_s10 = smov (!%p226_p2), 111  }
   0x9   : > { %s3894_s11 = smov (!%p226_p2), 110   ;;  %s3895_s12 = smov (!%p226_p2), 109  }
   0xb   : > { %v3887_v0 = vmov 0.0   ;;  %v3573_v1 = vld [vmem:[%s4414_s3 + $0x10] sm:$0xff]  ;;  %vm308_vm0 = vcmask 31744   ;;  %s4419_s22 = smov (!%p265_p3, %s3563_s22), 1  ;;  %vm304_vm1 = vcmask 146432   ;;  %vm315_vm2 = vcmask 1043456  }
   0xc   : > { %386 = vmatprep.mubr.f32.mxu0 %v3887_v0  ;;  %1956 = vst [vmem:[#allocation2] sm:$0x7] %v3887_v0  ;;  %3755 = vmatprep.mubr.msk.f32.mxu1 %vm308_vm0, %v3573_v1  ;;  %s3707_s25 = sshll.u32 %s4419_s22, 4  ;;  %v3574_v13 = vld [vmem:[%s4414_s3 + $0x18] sm:$0x7]  ;;  %vm482_vm3 = vcmask 154624  }
   0xd   : > { %s3952_s28 = scalar_lea.vmem %s4411_s0, %s3707_s25  ;;  %v287_v17 = vld [vmem:[%s4414_s3] sm:$0xff]  ;;  %v288_v22 = vld [vmem:[%s4414_s3 + $0x8] sm:$0x7]  ;;  %vm661_vm4 = vcmask 138240   ;;  %vm846_vm5 = vcmask 7168   ;;  %v3598_v35 = vld [vmem:[%s4414_s3 + $0x30] sm:$0xff] }
   0xe   : > { %v3955_v2 = vld [vmem:[%s3952_s28 + $0x8] sm:$0xff]  ;;  %v285_v3 = vld [vmem:[%s3952_s28] sm:$0xff]  ;;  %v3599_v38 = vld [vmem:[%s4414_s3 + $0x38] sm:$0x7]  ;;  %vm1202_vm6 = vcmask 1039360   ;;  %vm1384_vm7 = vcmask 908288  }
   0xf   : > { %300 = vrot.lane.b32.xlu0 %v3955_v2, %s3888_s29  ;;  %296 = vrot.lane.b32.xlu1 %v285_v3, %s3888_s29  ;;  %v3961_v4 = vcombine.high %v285_v3, %v285_v3  ;;  %v3965_v5 = vcombine.high %v3955_v2, %v3955_v2  ;;  %v3589_v26 = vld [vmem:[%s4414_s3 + $0x20] sm:$0xff]  ;;  %v3590_v31 = vld [vmem:[%s4414_s3 + $0x28] sm:$0x7]  ;;  %vm1566_vm8 = vcmask 900096   ;;  %vm1748_vm9 = vcmask 891904   ;;  %s4183_s23 = smul.u32 12, %s4419_s22 }
  0x10   : > { %v3607_v43 = vld [vmem:[%s4414_s3 + $0x40] sm:$0xff]  ;;  %v3608_v47 = vld [vmem:[%s4414_s3 + $0x48] sm:$0x7]  ;;  %v3616_v48 = vld [vmem:[%s4414_s3 + $0x50] sm:$0xff]  ;;  %vm1957_vm10 = vcmask 1042688   ;;  %vm1954_vm11 = vcmask 256000  }
  0x11   : > { %v3617_v52 = vld [vmem:[%s4414_s3 + $0x58] sm:$0x7]  ;;  %v3625_v57 = vld [vmem:[%s4414_s3 + $0x60] sm:$0xff]  ;;  %v3626_v61 = vld [vmem:[%s4414_s3 + $0x68] sm:$0x7]  ;;  %s274_s26 = scalar_lea.vmem %s4412_s1, %s4183_s23  ;;  %s284_s15 = scalar_lea.vmem %s4417_s6, %s4183_s23  ;;  %vm3896_vm12 = vmmov 0  }
  0x12   : > { %v3634_v62 = vld [vmem:[%s4414_s3 + $0x70] sm:$0xff]  ;;  %1958 = vst.msk [vmem:[#allocation2 + $0xc] sm:$0x7] %vm1957_vm10, %v3887_v0  ;;  %vm1985_vm13 = vcmask 1042432   ;;  %vm1981_vm14 = vcmask 23552   ;;  %vm3461_vm15 = vcmask 257024  }
  0x13   : > { %302 = vrot.lane.b32.xlu1 %v3965_v5, %s3888_s29  ;;  %298 = vrot.lane.b32.xlu0 %v3961_v4, %s3888_s29 }
  0x17   : > { %480 = vrot.lane.b32.xlu1 %v3965_v5, %s3889_s30  ;;  %478 = vrot.lane.b32.xlu0 %v3955_v2, %s3889_s30 }
  0x1b   : > { %474 = vrot.lane.b32.xlu1 %v285_v3, %s3889_s30  ;;  %476 = vrot.lane.b32.xlu0 %v3961_v4, %s3889_s30 }
  0x1f   : > { %657 = vrot.lane.b32.xlu1 %v3955_v2, %s3890_s7  ;;  %655 = vrot.lane.b32.xlu0 %v3961_v4, %s3890_s7 }
  0x23   : > { %659 = vrot.lane.b32.xlu1 %v3965_v5, %s3890_s7  ;;  %653 = vrot.lane.b32.xlu0 %v285_v3, %s3890_s7 }
  0x27   : > { %844 = vrot.lane.b32.xlu1 %v3965_v5, %s3891_s8  ;;  %842 = vrot.lane.b32.xlu0 %v3955_v2, %s3891_s8 }
  0x2b   : > { %840 = vrot.lane.b32.xlu0 %v3961_v4, %s3891_s8  ;;  %838 = vrot.lane.b32.xlu1 %v285_v3, %s3891_s8  ;;  %v3635_v3 = vld [vmem:[%s4414_s3 + $0x78] sm:$0x7] }
  0x2f   : > { %1200 = vrot.lane.b32.xlu0 %v3965_v5, %s3892_s9  ;;  %1198 = vrot.lane.b32.xlu1 %v3955_v2, %s3892_s9 }
  0x33   : > { %1196 = vrot.lane.b32.xlu0 %v3961_v4, %s3892_s9  ;;  %1380 = vrot.lane.b32.xlu1 %v3955_v2, %s3893_s10 }
  0x37   : > { %1382 = vrot.lane.b32.xlu0 %v3965_v5, %s3893_s10  ;;  %1378 = vrot.lane.b32.xlu1 %v3961_v4, %s3893_s10 }
  0x3b   : > { %1564 = vrot.lane.b32.xlu0 %v3965_v5, %s3894_s11  ;;  %1562 = vrot.lane.b32.xlu1 %v3955_v2, %s3894_s11 }
  0x3f   : > { %1560 = vrot.lane.b32.xlu0 %v3961_v4, %s3894_s11  ;;  %1744 = vrot.lane.b32.xlu1 %v3955_v2, %s3895_s12 }
  0x43   : > { %1746 = vrot.lane.b32.xlu0 %v3965_v5, %s3895_s12  ;;  %1742 = vrot.lane.b32.xlu1 %v3961_v4, %s3895_s12 }
  0x81   : > { %v301_v6 = vpop.permute.xlu0 %300  ;;  %v297_v7 = vpop.permute.xlu1 %296 }
  0x85   : > { %v303_v8 = vpop.permute.xlu1 %302  ;;  %v299_v9 = vpop.permute.xlu0 %298 }
  0x86   : > { %v306_v10 = vsel %vm304_vm1, %v299_v9, %v301_v6  ;;  %v307_v11 = vsel %vm304_vm1, %v301_v6, %v303_v8  ;;  %v305_v12 = vsel %vm304_vm1, %v297_v7, %v299_v9  ;;  %v3643_v8 = vld [vmem:[%s4414_s3 + $0x80] sm:$0xff]  ;;  %v3644_v9 = vld [vmem:[%s4414_s3 + $0x88] sm:$0x7] }
  0x87   : > { %3575 = vmatprep.subr.msk.mxu0 %vm315_vm2, %v306_v10  ;;  %3753 = vmatprep.subr.msk.mxu1 %vm315_vm2, %v307_v11 }
  0x88   : > { %3576 = vmatpush1.msk.msra.mxu0 %vm315_vm2, %v305_v12  ;;  %3754 = vmatpush3.msk.msra.mxu1 %vm315_vm2, %v307_v11 }
  0x89   : > { %v481_v14 = vpop.permute.xlu1 %480  ;;  %3577 = vmatmul.mubr.msk.f32.vlgmr.msra.gmra.mxu0 %vm308_vm0, %v3573_v1  ;;  %v479_v15 = vpop.permute.xlu0 %478  ;;  %3756 = vmatmul.mubr.msk.f32.vlgmr.msra.gmra.mxu1 %vm308_vm0, %v3574_v13 }
  0x8a   : > { %v485_v16 = vsel %vm482_vm3, %v479_v15, %v481_v14  ;;  %392 = vmatprep.mubr.f32.mxu0 %v3887_v0  ;;  %562 = vmatprep.mubr.f32.mxu1 %v3887_v0 }
  0x8b   : > { %3758 = vmatprep.subr.msk.mxu0 %vm315_vm2, %v485_v16 }
  0x8c   : > { %3759 = vmatpush3.msk.msra.mxu0 %vm315_vm2, %v485_v16 }
  0x8d   : > { %v475_v18 = vpop.permute.xlu1 %474  ;;  %3578 = vmatmul.mubr.msk.f32.gmra.mxu0 %vm308_vm0, %v3574_v13  ;;  %v477_v19 = vpop.permute.xlu0 %476 }
  0x8e   : > { %v483_v20 = vsel %vm482_vm3, %v475_v18, %v477_v19  ;;  %v484_v21 = vsel %vm482_vm3, %v477_v19, %v479_v15  ;;  %3760 = vmatprep.mubr.msk.f32.mxu0 %vm308_vm0, %v287_v17 }
  0x8f   : > { %3582 = vmatprep.subr.msk.mxu1 %vm315_vm2, %v484_v21 }
  0x90   : > { %3583 = vmatpush1.msk.msra.mxu1 %vm315_vm2, %v483_v20 }
  0x91   : > { %v658_v23 = vpop.permute.xlu1 %657  ;;  %3584 = vmatmul.mubr.msk.f32.vlgmr.msra.gmra.mxu1 %vm308_vm0, %v287_v17  ;;  %3761 = vmatmul.mubr.msk.f32.vlgmr.msra.gmra.mxu0 %vm308_vm0, %v288_v22  ;;  %v656_v24 = vpop.permute.xlu0 %655 }
  0x92   : > { %v663_v25 = vsel %vm661_vm4, %v656_v24, %v658_v23  ;;  %568 = vmatprep.mubr.f32.mxu1 %v3887_v0  ;;  %741 = vmatprep.mubr.f32.mxu0 %v3887_v0 }
  0x93   : > { %3591 = vmatprep.subr.msk.mxu0 %vm315_vm2, %v663_v25 }
  0x95   : > { %v660_v27 = vpop.permute.xlu1 %659  ;;  %3585 = vmatmul.mubr.msk.f32.gmra.mxu1 %vm308_vm0, %v288_v22  ;;  %v654_v28 = vpop.permute.xlu0 %653 }
  0x96   : > { %v664_v29 = vsel %vm661_vm4, %v658_v23, %v660_v27  ;;  %v662_v30 = vsel %vm661_vm4, %v654_v28, %v656_v24  ;;  %3765 = vmatprep.mubr.msk.f32.mxu1 %vm308_vm0, %v3589_v26 }
  0x97   : > { %3592 = vmatpush1.msk.msra.mxu0 %vm315_vm2, %v662_v30  ;;  %3763 = vmatprep.subr.msk.mxu1 %vm315_vm2, %v664_v29 }
  0x98   : > { %3593 = vmatmul.mubr.msk.f32.vlgmr.msra.gmra.mxu0 %vm308_vm0, %v3589_v26  ;;  %3764 = vmatpush3.msk.msra.mxu1 %vm315_vm2, %v664_v29 }
  0x99   : > { %v845_v32 = vpop.permute.xlu1 %844  ;;  %3766 = vmatmul.mubr.msk.f32.vlgmr.msra.gmra.mxu1 %vm308_vm0, %v3590_v31  ;;  %v843_v33 = vpop.permute.xlu0 %842  ;;  %747 = vmatprep.mubr.f32.mxu0 %v3887_v0 }
  0x9a   : > { %v849_v34 = vsel %vm846_vm5, %v843_v33, %v845_v32  ;;  %926 = vmatprep.mubr.f32.mxu1 %v3887_v0 }
  0x9b   : > { %3768 = vmatprep.subr.msk.mxu0 %vm315_vm2, %v849_v34 }
  0x9c   : > { %3594 = vmatmul.mubr.msk.f32.gmra.mxu0 %vm308_vm0, %v3590_v31 }
  0x9d   : > { %3769 = vmatpush3.msk.msra.mxu0 %vm315_vm2, %v849_v34  ;;  %v841_v36 = vpop.permute.xlu0 %840  ;;  %v839_v37 = vpop.permute.xlu1 %838  ;;  %3770 = vmatprep.mubr.msk.f32.mxu0 %vm308_vm0, %v3598_v35 }
  0x9e   : > { %v848_v39 = vsel %vm846_vm5, %v841_v36, %v843_v33  ;;  %v847_v40 = vsel %vm846_vm5, %v839_v37, %v841_v36  ;;  %3609 = vmatprep.subr.msk.mxu0 %vm315_vm2, %v3955_v2 }
  0x9f   : > { %3600 = vmatprep.subr.msk.mxu1 %vm315_vm2, %v848_v39 }
  0xa0   : > { %3601 = vmatpush1.msk.msra.mxu1 %vm315_vm2, %v847_v40  ;;  %3771 = vmatmul.mubr.msk.f32.vlgmr.msra.gmra.mxu0 %vm308_vm0, %v3599_v38 }
  0xa1   : > { %3602 = vmatmul.mubr.msk.f32.vlgmr.msra.gmra.mxu1 %vm308_vm0, %v3598_v35  ;;  %v1201_v41 = vpop.permute.xlu0 %1200  ;;  %v1199_v42 = vpop.permute.xlu1 %1198  ;;  %3610 = vmatpush1.msk.msra.mxu0 %vm315_vm2, %v3961_v4 }
  0xa2   : > { %1099 = vmatprep.mubr.f32.mxu0 %v3887_v0  ;;  %932 = vmatprep.mubr.f32.mxu1 %v3887_v0  ;;  %v1204_v44 = vsel %vm1202_vm6, %v1199_v42, %v1201_v41 }
  0xa3   : > { %3773 = vmatprep.subr.msk.mxu1 %vm315_vm2, %v3965_v5  ;;  %3778 = vmatprep.subr.msk.mxu0 %vm315_vm2, %v1201_v41 }
  0xa4   : > { %3611 = vmatmul.mubr.msk.f32.vlgmr.msra.gmra.mxu0 %vm308_vm0, %v3607_v43  ;;  %3774 = vmatpush3.msk.msra.mxu1 %vm315_vm2, %v3965_v5 }
  0xa5   : > { %3603 = vmatmul.mubr.msk.f32.gmra.mxu1 %vm308_vm0, %v3599_v38  ;;  %v1197_v45 = vpop.permute.xlu0 %1196  ;;  %v1381_v46 = vpop.permute.xlu1 %1380  ;;  %3779 = vmatpush3.msk.msra.mxu0 %vm315_vm2, %v1201_v41 }
  0xa6   : > { %1105 = vmatprep.mubr.f32.mxu0 %v3887_v0  ;;  %3618 = vmatprep.subr.msk.mxu1 %vm315_vm2, %v1204_v44  ;;  %v1203_v49 = vsel %vm1202_vm6, %v1197_v45, %v1199_v42 }
  0xa7   : > { %3775 = vmatprep.mubr.msk.f32.mxu1 %vm308_vm0, %v3607_v43 }
  0xa8   : > { %3612 = vmatmul.mubr.msk.f32.gmra.mxu0 %vm308_vm0, %v3608_v47 }
  0xa9   : > { %3776 = vmatmul.mubr.msk.f32.vlgmr.msra.gmra.mxu1 %vm308_vm0, %v3608_v47  ;;  %v1383_v50 = vpop.permute.xlu0 %1382  ;;  %v1379_v51 = vpop.permute.xlu1 %1378  ;;  %3780 = vmatprep.mubr.msk.f32.mxu0 %vm308_vm0, %v3616_v48 }
  0xaa   : > { %3619 = vmatpush1.msk.msra.mxu1 %vm315_vm2, %v1203_v49  ;;  %v1385_v53 = vsel %vm1384_vm7, %v1379_v51, %v1381_v46  ;;  %v1386_v54 = vsel %vm1384_vm7, %v1381_v46, %v1383_v50  ;;  %1281 = vmatprep.mubr.f32.mxu1 %v3887_v0 }
  0xab   : > { %3627 = vmatprep.subr.msk.mxu0 %vm315_vm2, %v1386_v54  ;;  %3783 = vmatprep.subr.msk.mxu1 %vm315_vm2, %v1383_v50 }
  0xac   : > { %3781 = vmatmul.mubr.msk.f32.vlgmr.msra.gmra.mxu0 %vm308_vm0, %v3617_v52 }
  0xad   : > { %3628 = vmatpush1.msk.msra.mxu0 %vm315_vm2, %v1385_v53  ;;  %3620 = vmatmul.mubr.msk.f32.vlgmr.msra.gmra.mxu1 %vm308_vm0, %v3616_v48  ;;  %v1565_v55 = vpop.permute.xlu0 %1564  ;;  %v1563_v56 = vpop.permute.xlu1 %1562 }
  0xae   : > { %v1568_v58 = vsel %vm1566_vm8, %v1563_v56, %v1565_v55  ;;  %3784 = vmatpush3.msk.msra.mxu1 %vm315_vm2, %v1383_v50  ;;  %1463 = vmatprep.mubr.f32.mxu0 %v3887_v0 }
  0xaf   : > { %1287 = vmatprep.mubr.f32.mxu1 %v3887_v0  ;;  %3788 = vmatprep.subr.msk.mxu0 %vm315_vm2, %v1565_v55 }
  0xb0   : > { %3629 = vmatmul.mubr.msk.f32.vlgmr.msra.gmra.mxu0 %vm308_vm0, %v3625_v57  ;;  %3636 = vmatprep.subr.msk.mxu1 %vm315_vm2, %v1568_v58 }
  0xb1   : > { %3621 = vmatmul.mubr.msk.f32.gmra.mxu1 %vm308_vm0, %v3617_v52  ;;  %v1561_v59 = vpop.permute.xlu0 %1560  ;;  %v1745_v60 = vpop.permute.xlu1 %1744  ;;  %3789 = vmatpush3.msk.msra.mxu0 %vm315_vm2, %v1565_v55 }
  0xb2   : > { %1469 = vmatprep.mubr.f32.mxu0 %v3887_v0  ;;  %3785 = vmatprep.mubr.msk.f32.mxu1 %vm308_vm0, %v3625_v57  ;;  %v1567_v63 = vsel %vm1566_vm8, %v1561_v59, %v1563_v56 }
  0xb4   : > { %3630 = vmatmul.mubr.msk.f32.gmra.mxu0 %vm308_vm0, %v3626_v61 }
  0xb5   : > { %3786 = vmatmul.mubr.msk.f32.vlgmr.msra.gmra.mxu1 %vm308_vm0, %v3626_v61  ;;  %v1747_v1 = vpop.permute.xlu0 %1746  ;;  %v1743_v2 = vpop.permute.xlu1 %1742  ;;  %3790 = vmatprep.mubr.msk.f32.mxu0 %vm308_vm0, %v3634_v62 }
  0xb6   : > { %3637 = vmatpush1.msk.msra.mxu1 %vm315_vm2, %v1567_v63  ;;  %v1749_v6 = vsel %vm1748_vm9, %v1743_v2, %v1745_v60  ;;  %v1750_v7 = vsel %vm1748_vm9, %v1745_v60, %v1747_v1  ;;  %1645 = vmatprep.mubr.f32.mxu1 %v3887_v0 }
  0xb7   : > { %3645 = vmatprep.subr.msk.mxu0 %vm315_vm2, %v1750_v7  ;;  %3793 = vmatprep.subr.msk.mxu1 %vm315_vm2, %v1747_v1 }
  0xb8   : > { %3791 = vmatmul.mubr.msk.f32.vlgmr.msra.gmra.mxu0 %vm308_vm0, %v3635_v3 }
  0xb9   : > { %3646 = vmatpush1.msk.msra.mxu0 %vm315_vm2, %v1749_v6  ;;  %3638 = vmatmul.mubr.msk.f32.vlgmr.msra.gmra.mxu1 %vm308_vm0, %v3634_v62 }
  0xba   : > { %3794 = vmatpush3.msk.msra.mxu1 %vm315_vm2, %v1747_v1  ;;  %1827 = vmatprep.mubr.f32.mxu0 %v3887_v0 }
  0xbb   : > { %1651 = vmatprep.mubr.f32.mxu1 %v3887_v0  ;;  %3798 = vmatprep.subr.mxu0 %v3887_v0 }
  0xbc   : > { %3647 = vmatmul.mubr.msk.f32.vlgmr.msra.gmra.mxu0 %vm308_vm0, %v3643_v8 }
  0xbd   : > { %3639 = vmatmul.mubr.msk.f32.gmra.mxu1 %vm308_vm0, %v3635_v3  ;;  %1833 = vmatprep.mubr.f32.mxu0 %v3887_v0 }
  0xbe   : > { %3795 = vmatprep.mubr.msk.f32.mxu1 %vm308_vm0, %v3643_v8 }
  0xc0   : > { %3648 = vmatmul.mubr.msk.f32.gmra.mxu0 %vm308_vm0, %v3644_v9 }
  0xc1   : > { %3796 = vmatmul.mubr.msk.f32.vlgmr.msra.gmra.mxu1 %vm308_vm0, %v3644_v9  ;;  %3800 = vmatprep.mubr.msk.f32.mxu0 %vm3896_vm12, %v3887_v0 }
  0xc2   : > { %2056 = vmatprep.mubr.f32.mxu1 %v3887_v0 }
 0x149   : > { %v388_v10 = vpop.f32.mrf.mxu0  ;;  %v3757_v11 = vpop.f32.mrf.mxu1 }
 0x14b   : > { %v390_v12 = vpop.f32.mrf.mxu0  ;;  %v465_v14 = vpop.f32.mrf.mxu1 }
 0x14d   : > { %v394_v13 = vpop.f32.mrf.mxu0 }
 0x14f   : > { %v396_v15 = vpop.f32.mrf.mxu0 }
 0x151   : > { %v564_v16 = vpop.f32.mrf.mxu1  ;;  %v3762_v17 = vpop.f32.mrf.mxu0 }
 0x152   : > { %v565_v18 = vadd.f32 %v564_v16, %v388_v10  ;;  %v647_v59 = vadd.f32 %v3762_v17, %v3757_v11 }
 0x153   : > { %v566_v19 = vpop.f32.mrf.mxu1  ;;  %v641_v20 = vpop.f32.mrf.mxu0 }
 0x154   : > { %v567_v21 = vadd.f32 %v566_v19, %v390_v12  ;;  %v642_v22 = vadd.f32 %v641_v20, %v465_v14 }
 0x155   : > { %v570_v23 = vpop.f32.mrf.mxu1 }
 0x156   : > { %v571_v54 = vadd.f32 %v570_v23, %v394_v13 }
 0x157   : > { %v572_v24 = vpop.f32.mrf.mxu1 }
 0x158   : > { %v743_v25 = vpop.f32.mrf.mxu0  ;;  %v573_v60 = vadd.f32 %v572_v24, %v396_v15  ;;  %v1931_v15 = vlaneseq }
 0x159   : > { %v829_v26 = vadd.f32 %v743_v25, %v565_v18  ;;  %v3767_v27 = vpop.f32.mrf.mxu1 }
 0x15a   : > { %v745_v28 = vpop.f32.mrf.mxu0  ;;  %v834_v3 = vadd.f32 %v3767_v27, %v647_v59 }
 0x15b   : > { %v830_v29 = vadd.f32 %v745_v28, %v567_v21  ;;  %v820_v30 = vpop.f32.mrf.mxu1 }
 0x15c   : > { %v831_v31 = vadd.f32 %v820_v30, %v642_v22  ;;  %v749_v32 = vpop.f32.mrf.mxu0 }
 0x15d   : > { %v832_v61 = vadd.f32 %v749_v32, %v571_v54 }
 0x15e   : > { %v751_v33 = vpop.f32.mrf.mxu0 }
 0x15f   : > { %v833_v6 = vadd.f32 %v751_v33, %v573_v60 }
 0x160   : > { %v3772_v34 = vpop.f32.mrf.mxu0 }
 0x161   : > { %v928_v35 = vpop.f32.mrf.mxu1  ;;  %v1019_v12 = vadd.f32 %v3772_v34, %v834_v3 }
 0x162   : > { %v1014_v36 = vadd.f32 %v928_v35, %v829_v26  ;;  %v1005_v37 = vpop.f32.mrf.mxu0 }
 0x163   : > { %v1016_v38 = vadd.f32 %v1005_v37, %v831_v31  ;;  %v930_v39 = vpop.f32.mrf.mxu1 }
 0x164   : > { %v1015_v40 = vadd.f32 %v930_v39, %v830_v29  ;;  %v1101_v41 = vpop.f32.mrf.mxu0  ;;  %v1932_v29 = vshrl.u32 %v1931_v15, 7 }
 0x165   : > { %v1187_v42 = vadd.f32 %v1101_v41, %v1014_v36  ;;  %v934_v43 = vpop.f32.mrf.mxu1  ;;  %v1922_v41 = vld [vmem:[%s274_s26] sm:$0x77] }
 0x166   : > { %v1103_v44 = vpop.f32.mrf.mxu0  ;;  %v1017_v7 = vadd.f32 %v934_v43, %v832_v61  ;;  %v1925_v54 = vcombine.high %v1922_v41, %v1922_v41 }
 0x167   : > { %v1188_v45 = vadd.f32 %v1103_v44, %v1015_v40  ;;  %v936_v46 = vpop.f32.mrf.mxu1 }
 0x168   : > { %v1107_v47 = vpop.f32.mrf.mxu0  ;;  %v1018_v13 = vadd.f32 %v936_v46, %v833_v6  ;;  %v1933_v46 = vsub.s32 0, %v1932_v29 }
 0x169   : > { %v3777_v48 = vpop.f32.mrf.mxu1  ;;  %v1190_v18 = vadd.f32 %v1107_v47, %v1017_v7  ;;  %v1937_v47 = vsub.s32 1, %v1932_v29 }
 0x16a   : > { %v1109_v49 = vpop.f32.mrf.mxu0  ;;  %v1192_v19 = vadd.f32 %v3777_v48, %v1019_v12 }
 0x16b   : > { %v1178_v50 = vpop.f32.mrf.mxu1  ;;  %v1191_v20 = vadd.f32 %v1109_v49, %v1018_v13 }
 0x16c   : > { %v1189_v51 = vadd.f32 %v1178_v50, %v1016_v38  ;;  %v3782_v52 = vpop.f32.mrf.mxu0 }
 0x16d   : > { %v1283_v53 = vpop.f32.mrf.mxu1  ;;  %v1374_v25 = vadd.f32 %v3782_v52, %v1192_v19 }
 0x16e   : > { %v1369_v55 = vadd.f32 %v1283_v53, %v1187_v42  ;;  %v1360_v56 = vpop.f32.mrf.mxu0  ;;  %v1941_v42 = vsub.s32 2, %v1932_v29  ;;  %v1923_v53 = vld [vmem:[%s274_s26 + $0x8] sm:$0x7] }
 0x16f   : > { %v1371_v57 = vadd.f32 %v1360_v56, %v1189_v51  ;;  %v1285_v58 = vpop.f32.mrf.mxu1 }
 0x170   : > { %v1370_v62 = vadd.f32 %v1285_v58, %v1188_v45  ;;  %v1465_v63 = vpop.f32.mrf.mxu0  ;;  %v1921_v45 = vld [vmem:[%s4413_s2] sm:$0x7] }
 0x171   : > { %v1551_v1 = vadd.f32 %v1465_v63, %v1369_v55  ;;  %v1289_v2 = vpop.f32.mrf.mxu1  ;;  %v1942_v56 = vrot.slane %v1921_v45, %v1941_v42  ;;  %v1934_v59 = vrot.slane %v1921_v45, %v1933_v46  ;;  %v1938_v61 = vrot.slane %v1921_v45, %v1937_v47  ;;  %v3669_v46 = vld [vmem:[%s4415_s4 + $0xc] sm:$0xf] }
 0x172   : > { %v1467_v8 = vpop.f32.mrf.mxu0  ;;  %v1372_v21 = vadd.f32 %v1289_v2, %v1190_v18 }
 0x173   : > { %v1552_v9 = vadd.f32 %v1467_v8, %v1370_v62  ;;  %v1291_v10 = vpop.f32.mrf.mxu1 }
 0x174   : > { %v1471_v14 = vpop.f32.mrf.mxu0  ;;  %v1373_v26 = vadd.f32 %v1291_v10, %v1191_v20 }
 0x175   : > { %v3787_v16 = vpop.f32.mrf.mxu1  ;;  %v1554_v32 = vadd.f32 %v1471_v14, %v1372_v21 }
 0x176   : > { %v1473_v11 = vpop.f32.mrf.mxu0  ;;  %v1556_v33 = vadd.f32 %v3787_v16, %v1374_v25  ;;  %v1963_v25 = vld [vmem:[%s4415_s4] sm:$0xf] }
 0x177   : > { %v1542_v17 = vpop.f32.mrf.mxu1  ;;  %v1555_v38 = vadd.f32 %v1473_v11, %v1373_v26 }
 0x178   : > { %v1553_v22 = vadd.f32 %v1542_v17, %v1371_v57  ;;  %v3792_v23 = vpop.f32.mrf.mxu0  ;;  %v3652_v17 = vld [vmem:[%s4415_s4 + $0x4] sm:$0xf] }
 0x179   : > { %v1647_v24 = vpop.f32.mrf.mxu1  ;;  %v1738_v48 = vadd.f32 %v3792_v23, %v1556_v33 }
 0x17a   : > { %v1733_v27 = vadd.f32 %v1647_v24, %v1551_v1  ;;  %v1724_v28 = vpop.f32.mrf.mxu0 }
 0x17b   : > { %v4185_v30 = vadd.f32 %v1724_v28, %v1553_v22  ;;  %v1649_v31 = vpop.f32.mrf.mxu1 }
 0x17c   : > { %v1734_v34 = vadd.f32 %v1649_v31, %v1552_v9  ;;  %v1829_v35 = vpop.f32.mrf.mxu0 }
 0x17d   : > { %v4191_v36 = vadd.f32 %v1829_v35, %v1733_v27  ;;  %v1653_v37 = vpop.f32.mrf.mxu1 }
 0x17e   : > { %v1736_v39 = vadd.f32 %v1653_v37, %v1554_v32  ;;  %v1831_v40 = vpop.f32.mrf.mxu0 }
 0x17f   : > { %v4193_v43 = vadd.f32 %v1831_v40, %v1734_v34  ;;  %v1655_v44 = vpop.f32.mrf.mxu1 }
 0x180   : > { %v1737_v49 = vadd.f32 %v1655_v44, %v1555_v38  ;;  %v1835_v50 = vpop.f32.mrf.mxu0 }
 0x181   : > { %v1918_v51 = vadd.f32 %v1835_v50, %v1736_v39  ;;  %v3797_v52 = vpop.f32.mrf.mxu1  ;;  %v3663_v39 = vld [vmem:[%s4415_s4 + $0x8] sm:$0xf]  ;;  %v3675_v50 = vld [vmem:[%s4415_s4 + $0x10] sm:$0xf] }
 0x182   : > { %v1920_v55 = vadd.f32 %v3797_v52, %v1738_v48  ;;  %v1837_v57 = vpop.f32.mrf.mxu0 }
 0x183   : > { %v1927_v58 = vadd.f32 %v1922_v41, %v1918_v51  ;;  %v1919_v60 = vadd.f32 %v1837_v57, %v1737_v49 }
 0x184   : > { %v1929_v62 = vadd.f32 %v1923_v53, %v1920_v55 }
 0x185   : > { %v1928_v63 = vadd.f32 %v1925_v54, %v1919_v60  ;;  %v1946_v2 = vmul.f32 %v1934_v59, %v1927_v58  ;;  %v3681_v54 = vld [vmem:[%s4415_s4 + $0x14] sm:$0xf]  ;;  %v3687_v58 = vld [vmem:[%s4415_s4 + $0x18] sm:$0xf] }
 0x186   : > { %v1948_v1 = vmul.f32 %v1942_v56, %v1929_v62 }
 0x187   : > { %v1947_v3 = vmul.f32 %v1938_v61, %v1928_v63 }
 0x188   : > { %1955 = vst.msk [vmem:[%s284_s15 + $0x8] sm:$0x7] %vm1954_vm11, %v1948_v1  ;;  %1960 = vst.msk [vmem:[#allocation2 + $0xc] sm:$0x7] %vm1954_vm11, %v1948_v1  ;;  %v3693_v1 = vld [vmem:[%s4415_s4 + $0x1c] sm:$0xf] }
 0x189   : > { %v1951_v6 = vcombine.low %v1946_v2, %v1947_v3 }
 0x18b   : > { %1953 = vst [vmem:[%s284_s15] sm:$0x77] %v1951_v6  ;;  %1959 = vst [vmem:[#allocation2 + $0x4] sm:$0x77] %v1951_v6  ;;  %s279_s15 = scalar_lea.vmem %s4416_s5, %s4183_s23 }
 0x192   : > { %v4202_v7 = vld [vmem:[#allocation2 + $0x8] sm:$0x77]  ;;  %v1961_v8 = vld [vmem:[#allocation2] sm:$0x77] }
 0x193   : > { %1974 = vrot.lane.b32.xlu1 %v4202_v7, %s3888_s29  ;;  %1970 = vrot.lane.b32.xlu0 %v1961_v8, %s3888_s29  ;;  %v4211_v9 = vcombine.high %v1961_v8, %v1961_v8  ;;  %v4220_v10 = vcombine.high %v4202_v7, %v4202_v7 }
 0x197   : > { %2948 = vrot.lane.b32.xlu1 %v4202_v7, %s3893_s10  ;;  %2137 = vrot.lane.b32.xlu0 %v4202_v7, %s3889_s30 }
 0x19b   : > { %2133 = vrot.lane.b32.xlu0 %v1961_v8, %s3889_s30  ;;  %2135 = vrot.lane.b32.xlu1 %v4211_v9, %s3889_s30 }
 0x19f   : > { %2300 = vrot.lane.b32.xlu0 %v4202_v7, %s3890_s7  ;;  %1976 = vrot.lane.b32.xlu1 %v4220_v10, %s3888_s29 }
 0x1a3   : > { %2296 = vrot.lane.b32.xlu0 %v1961_v8, %s3890_s7  ;;  %2298 = vrot.lane.b32.xlu1 %v4211_v9, %s3890_s7 }
 0x1a7   : > { %2139 = vrot.lane.b32.xlu1 %v4220_v10, %s3889_s30  ;;  %1972 = vrot.lane.b32.xlu0 %v4211_v9, %s3888_s29 }
 0x1ab   : > { %2464 = vrot.lane.b32.xlu1 %v4211_v9, %s3891_s8  ;;  %2466 = vrot.lane.b32.xlu0 %v4202_v7, %s3891_s8 }
 0x1af   : > { %2302 = vrot.lane.b32.xlu1 %v4220_v10, %s3890_s7  ;;  %2462 = vrot.lane.b32.xlu0 %v1961_v8, %s3891_s8 }
 0x1b3   : > { %2468 = vrot.lane.b32.xlu1 %v4220_v10, %s3891_s8  ;;  %2785 = vrot.lane.b32.xlu0 %v4202_v7, %s3892_s9 }
 0x1b7   : > { %2787 = vrot.lane.b32.xlu1 %v4220_v10, %s3892_s9  ;;  %3111 = vrot.lane.b32.xlu0 %v4202_v7, %s3894_s11 }
 0x1bb   : > { %2946 = vrot.lane.b32.xlu1 %v4211_v9, %s3893_s10  ;;  %2783 = vrot.lane.b32.xlu0 %v4211_v9, %s3892_s9 }
 0x1bf   : > { %3113 = vrot.lane.b32.xlu1 %v4220_v10, %s3894_s11  ;;  %2950 = vrot.lane.b32.xlu0 %v4220_v10, %s3893_s10 }
 0x1c3   : > { %3274 = vrot.lane.b32.xlu1 %v4202_v7, %s3895_s12  ;;  %3109 = vrot.lane.b32.xlu0 %v4211_v9, %s3894_s11 }
 0x1c7   : > { %3272 = vrot.lane.b32.xlu1 %v4211_v9, %s3895_s12  ;;  %3276 = vrot.lane.b32.xlu0 %v4220_v10, %s3895_s12 }
 0x205   : > { %v1975_v12 = vpop.permute.xlu1 %1974  ;;  %v1971_v13 = vpop.permute.xlu0 %1970 }
 0x209   : > { %v4264_v14 = vpop.permute.xlu1 %2948  ;;  %v2138_v16 = vpop.permute.xlu0 %2137 }
 0x20d   : > { %v2134_v18 = vpop.permute.xlu0 %2133  ;;  %v2136_v19 = vpop.permute.xlu1 %2135 }
 0x20e   : > { %v2142_v29 = vsel %vm482_vm3, %v2136_v19, %v2138_v16  ;;  %v2141_v31 = vsel %vm482_vm3, %v2134_v18, %v2136_v19 }
 0x211   : > { %v2301_v11 = vpop.permute.xlu0 %2300  ;;  %v1977_v15 = vpop.permute.xlu1 %1976 }
 0x212   : > { %v1980_v20 = vsel %vm304_vm1, %v1975_v12, %v1977_v15 }
 0x213   : > { %3799 = vmatpush3.msk.msra.mxu0 %vm1985_vm13, %v1980_v20 }
 0x214   : > { %3803 = vmatprep.subr.mxu0 %v3887_v0  ;;  %3801 = vmatmul.mubr.msk.f32.vlgmr.msra.gmra.mxu0 %vm1981_vm14, %v3652_v17 }
 0x215   : > { %v2297_v21 = vpop.permute.xlu0 %2296  ;;  %v2299_v22 = vpop.permute.xlu1 %2298  ;;  %3805 = vmatprep.mubr.msk.f32.mxu0 %vm3896_vm12, %v3887_v0 }
 0x216   : > { %v2305_v34 = vsel %vm661_vm4, %v2299_v22, %v2301_v11  ;;  %v2304_v35 = vsel %vm661_vm4, %v2297_v21, %v2299_v22 }
 0x219   : > { %v2140_v23 = vpop.permute.xlu1 %2139  ;;  %v1973_v24 = vpop.permute.xlu0 %1972 }
 0x21a   : > { %v2143_v26 = vsel %vm482_vm3, %v2138_v16, %v2140_v23  ;;  %v1978_v27 = vsel %vm304_vm1, %v1971_v13, %v1973_v24  ;;  %v1979_v28 = vsel %vm304_vm1, %v1973_v24, %v1975_v12  ;;  %v4395_v13 = vpop.f32.mrf.mxu1 }
 0x21b   : > { %3653 = vmatprep.subr.msk.mxu1 %vm1985_vm13, %v1979_v28  ;;  %3804 = vmatpush3.msk.msra.mxu0 %vm1985_vm13, %v2143_v26 }
 0x21c   : > { %3654 = vmatpush1.msk.msra.mxu1 %vm1985_vm13, %v1978_v27  ;;  %3806 = vmatmul.mubr.msk.f32.vlgmr.msra.gmra.mxu0 %vm1981_vm14, %v1963_v25 }
 0x21d   : > { %v2465_v32 = vpop.permute.xlu1 %2464  ;;  %3655 = vmatmul.mubr.msk.f32.vlgmr.msra.gmra.mxu1 %vm1981_vm14, %v3652_v17  ;;  %3658 = vmatprep.subr.msk.mxu1 %vm1985_vm13, %v2142_v29  ;;  %v2467_v33 = vpop.permute.xlu0 %2466 }
 0x21e   : > { %3659 = vmatpush1.msk.msra.mxu1 %vm1985_vm13, %v2141_v31  ;;  %2217 = vmatprep.mubr.f32.mxu1 %v3887_v0  ;;  %v2471_v40 = vsel %vm846_vm5, %v2465_v32, %v2467_v33 }
 0x21f   : > { %3664 = vmatprep.subr.msk.mxu1 %vm1985_vm13, %v2305_v34  ;;  %3808 = vmatprep.subr.mxu0 %v3887_v0 }
 0x220   : > { %3810 = vmatprep.mubr.msk.f32.mxu0 %vm3896_vm12, %v3887_v0 }
 0x221   : > { %v2303_v37 = vpop.permute.xlu1 %2302  ;;  %3660 = vmatmul.mubr.msk.f32.vlgmr.msra.gmra.mxu1 %vm1981_vm14, %v1963_v25  ;;  %v2463_v38 = vpop.permute.xlu0 %2462 }
 0x222   : > { %v2306_v41 = vsel %vm661_vm4, %v2301_v11, %v2303_v37  ;;  %3665 = vmatpush1.msk.msra.mxu1 %vm1985_vm13, %v2304_v35  ;;  %2380 = vmatprep.mubr.f32.mxu1 %v3887_v0  ;;  %v2470_v42 = vsel %vm846_vm5, %v2463_v38, %v2465_v32 }
 0x223   : > { %3670 = vmatprep.subr.msk.mxu1 %vm1985_vm13, %v2471_v40  ;;  %3809 = vmatpush3.msk.msra.mxu0 %vm1985_vm13, %v2306_v41 }
 0x224   : > { %3811 = vmatmul.mubr.msk.f32.vlgmr.msra.gmra.mxu0 %vm1981_vm14, %v3663_v39  ;;  %3813 = vmatprep.subr.mxu0 %v3887_v0 }
 0x225   : > { %v2469_v44 = vpop.permute.xlu1 %2468  ;;  %3666 = vmatmul.mubr.msk.f32.vlgmr.msra.gmra.mxu1 %vm1981_vm14, %v3663_v39  ;;  %v2786_v45 = vpop.permute.xlu0 %2785  ;;  %3815 = vmatprep.mubr.msk.f32.mxu0 %vm3896_vm12, %v3887_v0 }
 0x226   : > { %v2472_v47 = vsel %vm846_vm5, %v2467_v33, %v2469_v44  ;;  %3671 = vmatpush1.msk.msra.mxu1 %vm1985_vm13, %v2470_v42  ;;  %2546 = vmatprep.mubr.f32.mxu1 %v3887_v0 }
 0x227   : > { %3676 = vmatprep.subr.msk.mxu1 %vm1985_vm13, %v4202_v7  ;;  %3814 = vmatpush3.msk.msra.mxu0 %vm1985_vm13, %v2472_v47  ;;  %v3699_v7 = vld [vmem:[%s4415_s4 + $0x20] sm:$0xf] }
 0x228   : > { %3816 = vmatmul.mubr.msk.f32.vlgmr.msra.gmra.mxu0 %vm1981_vm14, %v3669_v46  ;;  %3818 = vmatprep.subr.mxu0 %v3887_v0 }
 0x229   : > { %v2788_v48 = vpop.permute.xlu1 %2787  ;;  %3672 = vmatmul.mubr.msk.f32.vlgmr.msra.gmra.mxu1 %vm1981_vm14, %v3669_v46  ;;  %3819 = vmatpush3.msk.msra.mxu0 %vm1985_vm13, %v4220_v10  ;;  %v3112_v49 = vpop.permute.xlu0 %3111 }
 0x22a   : > { %v2790_v51 = vsel %vm1202_vm6, %v2786_v45, %v2788_v48  ;;  %3677 = vmatpush1.msk.msra.mxu1 %vm1985_vm13, %v4211_v9  ;;  %3820 = vmatprep.mubr.msk.f32.mxu0 %vm3896_vm12, %v3887_v0 }
 0x22b   : > { %3682 = vmatprep.subr.msk.mxu1 %vm1985_vm13, %v2790_v51  ;;  %3823 = vmatprep.subr.mxu0 %v3887_v0 }
 0x22c   : > { %2701 = vmatprep.mubr.f32.mxu1 %v3887_v0  ;;  %3821 = vmatmul.mubr.msk.f32.vlgmr.msra.gmra.mxu0 %vm1981_vm14, %v3675_v50 }
 0x22d   : > { %3824 = vmatpush3.msk.msra.mxu0 %vm1985_vm13, %v2788_v48  ;;  %v2947_v52 = vpop.permute.xlu1 %2946  ;;  %3678 = vmatmul.mubr.msk.f32.vlgmr.msra.gmra.mxu1 %vm1981_vm14, %v3675_v50  ;;  %v2784_v53 = vpop.permute.xlu0 %2783 }
 0x22e   : > { %v2789_v55 = vsel %vm1202_vm6, %v2784_v53, %v2786_v45  ;;  %3825 = vmatprep.mubr.msk.f32.mxu0 %vm3896_vm12, %v3887_v0  ;;  %2864 = vmatprep.mubr.f32.mxu1 %v3887_v0  ;;  %v2952_v60 = vsel %vm1384_vm7, %v2947_v52, %v4264_v14 }
 0x22f   : > { %3683 = vmatpush1.msk.msra.mxu1 %vm1985_vm13, %v2789_v55  ;;  %3828 = vmatprep.subr.mxu0 %v3887_v0 }
 0x230   : > { %3826 = vmatmul.mubr.msk.f32.vlgmr.msra.gmra.mxu0 %vm1981_vm14, %v3681_v54 }
 0x231   : > { %v3114_v56 = vpop.permute.xlu1 %3113  ;;  %3684 = vmatmul.mubr.msk.f32.vlgmr.msra.gmra.mxu1 %vm1981_vm14, %v3681_v54  ;;  %v2951_v57 = vpop.permute.xlu0 %2950  ;;  %3830 = vmatprep.mubr.msk.f32.mxu0 %vm3896_vm12, %v3887_v0 }
 0x232   : > { %v2953_v59 = vsel %vm1384_vm7, %v4264_v14, %v2951_v57  ;;  %3829 = vmatpush3.msk.msra.mxu0 %vm1985_vm13, %v2951_v57  ;;  %3027 = vmatprep.mubr.f32.mxu1 %v3887_v0  ;;  %v3116_v61 = vsel %vm1566_vm8, %v3112_v49, %v3114_v56 }
 0x233   : > { %3688 = vmatprep.subr.msk.mxu1 %vm1985_vm13, %v2953_v59  ;;  %3833 = vmatprep.subr.mxu0 %v3887_v0 }
 0x234   : > { %3689 = vmatpush1.msk.msra.mxu1 %vm1985_vm13, %v2952_v60  ;;  %3831 = vmatmul.mubr.msk.f32.vlgmr.msra.gmra.mxu0 %vm1981_vm14, %v3687_v58 }
 0x235   : > { %3834 = vmatpush3.msk.msra.mxu0 %vm1985_vm13, %v3114_v56  ;;  %v3275_v62 = vpop.permute.xlu1 %3274  ;;  %3690 = vmatmul.mubr.msk.f32.vlgmr.msra.gmra.mxu1 %vm1981_vm14, %v3687_v58  ;;  %v3110_v63 = vpop.permute.xlu0 %3109 }
 0x236   : > { %3694 = vmatprep.subr.msk.mxu1 %vm1985_vm13, %v3116_v61  ;;  %v3115_v2 = vsel %vm1566_vm8, %v3110_v63, %v3112_v49  ;;  %3835 = vmatprep.mubr.msk.f32.mxu0 %vm3896_vm12, %v3887_v0 }
 0x237   : > { %3695 = vmatpush1.msk.msra.mxu1 %vm1985_vm13, %v3115_v2  ;;  %3190 = vmatprep.mubr.f32.mxu1 %v3887_v0 }
 0x238   : > { %3836 = vmatmul.mubr.msk.f32.vlgmr.msra.gmra.mxu0 %vm1981_vm14, %v3693_v1  ;;  %3838 = vmatprep.subr.mxu0 %v3887_v0 }
 0x239   : > { %v3273_v3 = vpop.permute.xlu1 %3272  ;;  %3696 = vmatmul.mubr.msk.f32.vlgmr.msra.gmra.mxu1 %vm1981_vm14, %v3693_v1  ;;  %v3277_v6 = vpop.permute.xlu0 %3276  ;;  %3840 = vmatprep.mubr.msk.f32.mxu0 %vm3896_vm12, %v3887_v0 }
 0x23a   : > { %v3278_v8 = vsel %vm1748_vm9, %v3273_v3, %v3275_v62  ;;  %v3279_v9 = vsel %vm1748_vm9, %v3275_v62, %v3277_v6  ;;  %3839 = vmatpush3.msk.msra.mxu0 %vm1985_vm13, %v3277_v6  ;;  %3353 = vmatprep.mubr.f32.mxu1 %v3887_v0 }
 0x23b   : > { %3700 = vmatprep.subr.msk.mxu1 %vm1985_vm13, %v3279_v9 }
 0x23c   : > { %3701 = vmatpush1.msk.msra.mxu1 %vm1985_vm13, %v3278_v8  ;;  %3841 = vmatmul.mubr.msk.f32.vlgmr.msra.gmra.mxu0 %vm1981_vm14, %v3699_v7 }
 0x23d   : > { %3702 = vmatmul.mubr.msk.f32.vlgmr.msra.gmra.mxu1 %vm1981_vm14, %v3699_v7 }
 0x2d4   : > { %v2129_v10 = vpop.f32.mrf.mxu0 }
 0x2d6   : > { %v3802_v12 = vpop.f32.mrf.mxu0 }
 0x2dc   : > { %v2290_v14 = vpop.f32.mrf.mxu0 }
 0x2dd   : > { %v2058_v16 = vpop.f32.mrf.mxu1  ;;  %v2291_v27 = vadd.f32 %v2290_v14, %v2129_v10 }
 0x2de   : > { %v3807_v18 = vpop.f32.mrf.mxu0 }
 0x2df   : > { %v2060_v19 = vpop.f32.mrf.mxu1 }
 0x2e1   : > { %v2219_v11 = vpop.f32.mrf.mxu1 }
 0x2e2   : > { %v2220_v32 = vadd.f32 %v2219_v11, %v2058_v16 }
 0x2e3   : > { %v2221_v15 = vpop.f32.mrf.mxu1 }
 0x2e4   : > { %v2453_v17 = vpop.f32.mrf.mxu0  ;;  %v2222_v37 = vadd.f32 %v2221_v15, %v2060_v19 }
 0x2e5   : > { %v2382_v0 = vpop.f32.mrf.mxu1  ;;  %v2459_v34 = vadd.f32 %v2453_v17, %v2291_v27 }
 0x2e6   : > { %v3812_v20 = vpop.f32.mrf.mxu0  ;;  %v2457_v38 = vadd.f32 %v2382_v0, %v2220_v32 }
 0x2e7   : > { %v2384_v21 = vpop.f32.mrf.mxu1 }
 0x2e8   : > { %v2619_v22 = vpop.f32.mrf.mxu0  ;;  %v2458_v42 = vadd.f32 %v2384_v21, %v2222_v37 }
 0x2e9   : > { %v2548_v23 = vpop.f32.mrf.mxu1  ;;  %v2625_v40 = vadd.f32 %v2619_v22, %v2459_v34  ;;  %v3878_v34 = vld [vmem:[%s3952_s28 + $0x8] sm:$0xff] }
 0x2ea   : > { %v3817_v24 = vpop.f32.mrf.mxu0  ;;  %v2623_v44 = vadd.f32 %v2548_v23, %v2457_v38 }
 0x2eb   : > { %v2550_v25 = vpop.f32.mrf.mxu1  ;;  %v1917_v24 = vadd.f32 %v4395_v13, %v4185_v30 }
 0x2ec   : > { %v2774_v26 = vpop.f32.mrf.mxu0  ;;  %v2624_v48 = vadd.f32 %v2550_v25, %v2458_v42 }
 0x2ed   : > { %v2703_v28 = vpop.f32.mrf.mxu1  ;;  %v2780_v46 = vadd.f32 %v2774_v26, %v2625_v40 }
 0x2ee   : > { %v3822_v29 = vpop.f32.mrf.mxu0  ;;  %v2778_v49 = vadd.f32 %v2703_v28, %v2623_v44 }
 0x2ef   : > { %v2705_v31 = vpop.f32.mrf.mxu1 }
 0x2f0   : > { %v2937_v33 = vpop.f32.mrf.mxu0  ;;  %v2779_v53 = vadd.f32 %v2705_v31, %v2624_v48 }
 0x2f1   : > { %v2866_v35 = vpop.f32.mrf.mxu1  ;;  %v2943_v51 = vadd.f32 %v2937_v33, %v2780_v46 }
 0x2f2   : > { %v3827_v39 = vpop.f32.mrf.mxu0  ;;  %v2941_v54 = vadd.f32 %v2866_v35, %v2778_v49 }
 0x2f3   : > { %v2868_v41 = vpop.f32.mrf.mxu1 }
 0x2f4   : > { %v3100_v45 = vpop.f32.mrf.mxu0  ;;  %v2942_v58 = vadd.f32 %v2868_v41, %v2779_v53 }
 0x2f5   : > { %v3029_v47 = vpop.f32.mrf.mxu1  ;;  %v3106_v56 = vadd.f32 %v3100_v45, %v2943_v51 }
 0x2f6   : > { %v3832_v50 = vpop.f32.mrf.mxu0  ;;  %v3104_v59 = vadd.f32 %v3029_v47, %v2941_v54 }
 0x2f7   : > { %v3031_v52 = vpop.f32.mrf.mxu1 }
 0x2f8   : > { %v3263_v55 = vpop.f32.mrf.mxu0  ;;  %v3105_v63 = vadd.f32 %v3031_v52, %v2942_v58 }
 0x2f9   : > { %v3192_v57 = vpop.f32.mrf.mxu1  ;;  %v3269_v61 = vadd.f32 %v3263_v55, %v3106_v56 }
 0x2fa   : > { %v3837_v60 = vpop.f32.mrf.mxu0  ;;  %v3267_v1 = vadd.f32 %v3192_v57, %v3104_v59 }
 0x2fb   : > { %v3194_v62 = vpop.f32.mrf.mxu1 }
 0x2fc   : > { %v3426_v2 = vpop.f32.mrf.mxu0  ;;  %v3268_v7 = vadd.f32 %v3194_v62, %v3105_v63 }
 0x2fd   : > { %v3432_v3 = vadd.f32 %v3426_v2, %v3269_v61  ;;  %v3355_v6 = vpop.f32.mrf.mxu1 }
 0x2fe   : > { %v3430_v8 = vadd.f32 %v3355_v6, %v3267_v1  ;;  %v3842_v9 = vpop.f32.mrf.mxu0 }
 0x2ff   : > { %v3435_v10 = vsub.f32 0.0, %v3432_v3  ;;  %v3357_v12 = vpop.f32.mrf.mxu1 }
 0x300   : > { %v3433_v14 = vsub.f32 0.0, %v3430_v8  ;;  %v3431_v16 = vadd.f32 %v3357_v12, %v3268_v7 }
 0x301   : > { %v3440_v18 = vmul.f32 1.442695, %v3435_v10 }
 0x302   : > { %v3436_v19 = vmul.f32 1.442695, %v3433_v14  ;;  %v3434_v11 = vsub.f32 0.0, %v3431_v16 }
 0x303   : > { %3866 = vpow2.f32 %v3440_v18 }
 0x304   : > { %3868 = vpow2.f32 %v3436_v19  ;;  %v3438_v15 = vmul.f32 1.442695, %v3434_v11 }
 0x306   : > { %3870 = vpow2.f32 %v3438_v15 }
 0x310   : > { %v3867_v17 = vpop.eup %3866 }
 0x311   : > { %v3869_v0 = vpop.eup %3868  ;;  %v3444_v20 = vadd.f32 1.0, %v3867_v17 }
 0x312   : > { %v3442_v21 = vadd.f32 1.0, %v3869_v0 }
 0x313   : > { %v3871_v22 = vpop.eup %3870  ;;  %3872 = vrcp.f32 %v3444_v20 }
 0x314   : > { %3874 = vrcp.f32 %v3442_v21  ;;  %v3443_v23 = vadd.f32 1.0, %v3871_v22 }
 0x316   : > { %3876 = vrcp.f32 %v3443_v23 }
 0x320   : > { %v3873_v25 = vpop.eup %3872 }
 0x321   : > { %v3875_v26 = vpop.eup %3874  ;;  %v3450_v27 = vmul.f32 %v3873_v25, %v1917_v24 }
 0x322   : > { %v3448_v28 = vmul.f32 %v3875_v26, %v4191_v36 }
 0x323   : > { %v3877_v29 = vpop.eup %3876  ;;  %v3455_v31 = vadd.f32 %v3450_v27, %v3965_v5 }
 0x324   : > { %v3449_v32 = vmul.f32 %v3877_v29, %v4193_v43  ;;  %v3453_v33 = vadd.f32 %v3448_v28, %v3961_v4 }
 0x325   : > { %3462 = vst.msk [vmem:[%s279_s15 + $0x8] sm:$0xf] %vm3461_vm15, %v3455_v31 }
 0x326   : > { %v3454_v30 = vadd.f32 %v3878_v34, %v3449_v32 }
 0x328   : > { %v3458_v13 = vcombine.low %v3453_v33, %v3454_v30 }
 0x32a   : > { %3460 = vst [vmem:[%s279_s15] sm:$0xff] %v3458_v13 }
 0x32b PF: > { %s17_s21 = sadd.s32 1, %s3885_s21  }
 0x32c   : > { %p14_p4 = scmp.ge.s32.totalorder %s17_s21, 4  }
 0x32e   :  { %16 = sbr.rel (!%p14_p4) target bundleno = 1 (0x1), region = 101 }

</bundles_post_ra>
